<compile_context>
chip_gen: v7x
topology: tpu7x:2x2x1
jax: 0.10.0
libtpu: 0.0.40
codegen_flags: <defaults>
</compile_context>

<pallas_src>
import functools

import numpy as np
import jax
import jax.numpy as jnp
from jax.experimental import pallas as pl
from jax.experimental.pallas import tpu as pltpu


def _mse_kernel(ypT_ref, yt_ref, out_ref, acc_ref, *, inv_r):
    # ypT_ref: (K, TR) VMEM, yt_ref: (1, TR) VMEM,
    # out_ref: (1, 1) SMEM,  acc_ref: (1, TR) f32 VMEM scratch (resident).
    pid = pl.program_id(0)

    @pl.when(pid == 0)
    def _init():
        acc_ref[...] = jnp.zeros_like(acc_ref)

    # Sum over the channel axis (sublanes); result stays lane-dense (1, TR).
    s = jnp.sum(ypT_ref[...], axis=0, keepdims=True)
    d = s - yt_ref[...]
    acc_ref[...] += d * d

    @pl.when(pid == pl.num_programs(0) - 1)
    def _finalize():
        # Single cross-lane reduce + hoisted 1/R scaling.
        out_ref[0, 0] = jnp.sum(acc_ref[...]) * inv_r


def mse_loss(y_pred, y_true):
    """JAX/Pallas equivalent of flamo mse_loss.forward(y_pred, y_true)."""
    yp = jnp.asarray(y_pred, dtype=jnp.float32)
    yt = jnp.asarray(y_true, dtype=jnp.float32)

    # torch .squeeze(-1): drop the last dim only if it equals 1.
    if yt.ndim > 0 and yt.shape[-1] == 1:
        yt = yt[..., 0]
    if yt.shape != yp.shape[:-1]:
        raise ValueError(
            "y_true (after squeeze(-1)) must match sum(y_pred, -1) shape: "
            f"{yt.shape} vs {yp.shape[:-1]}")

    K = yp.shape[-1]
    R = int(np.prod(yp.shape[:-1])) if yp.ndim > 1 else 1

    # Lane-dense layout: K on sublanes, R on lanes.
    ypT = yp.reshape(R, K).T        # (K, R)
    yt1 = yt.reshape(1, R)          # (1, R)

    # --- tile sizing ---
    LANE = 128
    # Per-lane f32 bytes of the steady-state working set:
    #   2 pipeline buffers x (K + 1) rows  +  1 accumulator row.
    per_lane_bytes = 4 * (2 * (K + 1) + 1)
    budget_bytes = 12 * 1024 * 1024          # fits v5e's 16 MiB scoped default
    tr_budget = max(LANE, (budget_bytes // per_lane_bytes) // LANE * LANE)
    r_pad128 = ((R + LANE - 1) // LANE) * LANE
    TR = min(tr_budget, r_pad128)

    n_tiles = -(-R // TR)                    # cdiv
    R_pad = n_tiles * TR
    if R_pad != R:
        # Exact (see header comment); XLA fuses the pad with the transpose.
        ypT = jnp.pad(ypT, ((0, 0), (0, R_pad - R)))
        yt1 = jnp.pad(yt1, ((0, 0), (0, R_pad - R)))

    kernel = functools.partial(_mse_kernel, inv_r=float(1.0 / R))

    out = pl.pallas_call(
        kernel,
        out_shape=jax.ShapeDtypeStruct((1, 1), jnp.float32),
        grid_spec=pltpu.PrefetchScalarGridSpec(
            num_scalar_prefetch=0,
            grid=(n_tiles,),
            in_specs=[
                pl.BlockSpec((K, TR), lambda i: (0, i)),   # y_pred^T tiles
                pl.BlockSpec((1, TR), lambda i: (0, i)),   # y_true tiles
            ],
            out_specs=pl.BlockSpec(
                (1, 1), lambda i: (0, 0),
                memory_space=pltpu.MemorySpace.SMEM),
            scratch_shapes=[pltpu.VMEM((1, TR), jnp.float32)],
        ),
        compiler_params=pltpu.CompilerParams(
            dimension_semantics=("arbitrary",),
        ),
    )(ypT, yt1)
    # TODO(synk): optional v7x-only 2-TC split (leading "parallel" grid axis
    # with per-core partial sums combined in the wrapper); no benefit on
    # v5e/v6e which have a single TensorCore.
    return out[0, 0]


def _reference(y_pred, y_true):
    y_pred_sum = jnp.sum(y_pred, axis=-1)
    return jnp.mean((y_pred_sum - jnp.squeeze(y_true, axis=-1)) ** 2)


if __name__ == "__main__":
    key = jax.random.PRNGKey(0)
    k1, k2 = jax.random.split(key)

    # Small shapes consistent with the module: (batch, nfft, channels).
    B, NFFT, K = 2, 16, 8
    y_pred = jax.random.normal(k1, (B, NFFT, K), dtype=jnp.float32)
    y_true = jax.random.normal(k2, (B, NFFT, 1), dtype=jnp.float32)

    loss = mse_loss(y_pred, y_true)
    loss = jax.block_until_ready(loss)

    ref = _reference(y_pred, y_true)
    assert jnp.allclose(loss, ref, rtol=1e-5, atol=1e-5), (loss, ref)

    print("KERNEL_OK")
</pallas_src>

<mosaic_0001>
module attributes {stable_mosaic.version = 11 : i64} {
  func.func @_mse_kernel(%arg0: i32, %arg1: memref<8x128xf32, #tpu.memory_space<vmem>>, %arg2: memref<1x128xf32, #tpu.memory_space<vmem>>, %arg3: memref<1x1xf32, #tpu.memory_space<smem>>, %arg4: memref<1x128xf32, #tpu.memory_space<vmem>>) attributes {dimension_semantics = [#tpu.dimension_semantics<arbitrary>], iteration_bounds = array<i64: 1>, scalar_prefetch = 0 : i64, scratch_operands = 1 : i64, tpu.core_type = #tpu.core_type<tc>, window_params = [{transform_indices = @transform_0, window_bounds = array<i64: 8, 128>}, {transform_indices = @transform_1, window_bounds = array<i64: 1, 128>}, {transform_indices = @transform_2, window_bounds = array<i64: 1, 1>}]} {
    %c0_i32 = arith.constant 0 : i32
    %0 = arith.cmpi eq, %arg0, %c0_i32 : i32
    %1 = arith.extui %0 : i1 to i32
    %c0_i32_0 = arith.constant 0 : i32
    %2 = arith.cmpi ne, %1, %c0_i32_0 : i32
    scf.if %2 {
      %cst_10 = arith.constant 0.000000e+00 : f32
      %15 = vector.broadcast %cst_10 : f32 to vector<1x128xf32>
      %c0_11 = arith.constant 0 : index
      %c0_12 = arith.constant 0 : index
      %16 = vector.load %arg4[%c0_11, %c0_12] : memref<1x128xf32, #tpu.memory_space<vmem>>, vector<1x128xf32>
      tpu.vector_store %arg4[%c0_11, %c0_12], %15 {strides = array<i32>} : memref<1x128xf32, #tpu.memory_space<vmem>>, vector<1x128xf32>,
    } else {
    }
    %c0 = arith.constant 0 : index
    %c0_1 = arith.constant 0 : index
    %3 = vector.load %arg1[%c0, %c0_1] : memref<8x128xf32, #tpu.memory_space<vmem>>, vector<8x128xf32>
    %cst = arith.constant dense<0.000000e+00> : vector<128xf32>
    %4 = vector.multi_reduction <add>, %3, %cst [0] : vector<8x128xf32> to vector<128xf32>
    %5 = vector.shape_cast %4 : vector<128xf32> to vector<1x128xf32>
    %c0_2 = arith.constant 0 : index
    %c0_3 = arith.constant 0 : index
    %6 = vector.load %arg2[%c0_2, %c0_3] : memref<1x128xf32, #tpu.memory_space<vmem>>, vector<1x128xf32>
    %7 = arith.subf %5, %6 : vector<1x128xf32>
    %c0_4 = arith.constant 0 : index
    %c0_5 = arith.constant 0 : index
    %8 = vector.load %arg4[%c0_4, %c0_5] : memref<1x128xf32, #tpu.memory_space<vmem>>, vector<1x128xf32>
    %9 = arith.mulf %7, %7 : vector<1x128xf32>
    %10 = arith.addf %8, %9 : vector<1x128xf32>
    %c0_6 = arith.constant 0 : index
    %c0_7 = arith.constant 0 : index
    %11 = vector.load %arg4[%c0_6, %c0_7] : memref<1x128xf32, #tpu.memory_space<vmem>>, vector<1x128xf32>
    tpu.vector_store %arg4[%c0_6, %c0_7], %10 {strides = array<i32>} : memref<1x128xf32, #tpu.memory_space<vmem>>, vector<1x128xf32>,
    %c0_i32_8 = arith.constant 0 : i32
    %12 = arith.cmpi eq, %arg0, %c0_i32_8 : i32
    %13 = arith.extui %12 : i1 to i32
    %c0_i32_9 = arith.constant 0 : i32
    %14 = arith.cmpi ne, %13, %c0_i32_9 : i32
    scf.if %14 {
      %c0_10 = arith.constant 0 : index
      %c0_11 = arith.constant 0 : index
      %15 = vector.load %arg4[%c0_10, %c0_11] : memref<1x128xf32, #tpu.memory_space<vmem>>, vector<1x128xf32>
      %16 = vector.shape_cast %15 : vector<1x128xf32> to vector<1x1x128xf32>
      %cst_12 = arith.constant dense<0.000000e+00> : vector<1xf32>
      %17 = vector.multi_reduction <add>, %16, %cst_12 [1, 2] : vector<1x1x128xf32> to vector<1xf32>
      %18 = vector.shape_cast %17 : vector<1xf32> to vector<1x1x1xf32>
      %19 = vector.extract %18[0, 0, 0] : f32 from vector<1x1x1xf32>
      %cst_13 = arith.constant 3.125000e-02 : f32
      %20 = arith.mulf %19, %cst_13 : f32
      %c0_14 = arith.constant 0 : index
      %c0_15 = arith.constant 0 : index
      %21 = memref.load %arg3[%c0_14, %c0_15] : memref<1x1xf32, #tpu.memory_space<smem>>
      memref.store %20, %arg3[%c0_14, %c0_15] : memref<1x1xf32, #tpu.memory_space<smem>>
    } else {
    }
    return
  }
  func.func @transform_0(%arg0: i32) -> (i32, i32) {
    %c0_i32 = arith.constant 0 : i32
    %c0_i32_0 = arith.constant 0 : i32
    return %c0_i32, %arg0 : i32, i32
  }
  func.func @transform_1(%arg0: i32) -> (i32, i32) {
    %c0_i32 = arith.constant 0 : i32
    %c0_i32_0 = arith.constant 0 : i32
    return %c0_i32, %arg0 : i32, i32
  }
  func.func @transform_2(%arg0: i32) -> (i32, i32) {
    %c0_i32 = arith.constant 0 : i32
    %c0_i32_0 = arith.constant 0 : i32
    %c0_i32_1 = arith.constant 0 : i32
    return %c0_i32, %c0_i32_0 : i32, i32
  }
}

</mosaic_0001>

<bundles_post_ra>
// kernel: tpu_custom_call.1
= control target key start
LH: loop header
LB: loop body
LE: loop exit
PB: predicated region body
PF: predicated region fallthrough
CT: control target
= control target key end

     0   :  { %7 = vsyncpa [#allocation4], 0  ;;  %s160_s0 = inlined_call_operand.hbm [shape: f32[8,128], index: 0, kind: input, shape index: {}]   ;;  %s161_s1 = inlined_call_operand.vmem [shape: f32[1,128], index: 1, kind: input, shape index: {}]   ;;  %s162_s2 = inlined_call_operand.hbm [shape: f32[1,1], index: 2, kind: output, shape index: {}]  }
   0x1   :  { %8 = vsyncpa [#allocation5], 0  ;;  %s115_s9 = smov [#allocation3]   ;;  %s79_s13 = scalar_lea.hbm %s160_s0, 128 }
   0x2   :  { %s15_s10 = sshll.u32 %s115_s9, 4  ;;  %p80_p0 = scmp.ne.s32.totalorder %s160_s0, %s79_s13  ;;  %s16_s10 = int_to_ptr.vmem [resolvable:$true] %s15_s10 }
   0x3   :  { %p83_p1 = scmp.lt.u32.totalorder %s79_s13, %s160_s0 }
   0x5   :  { %p85_p2 = pnand %p83_p1, %p80_p0 }
   0x7   :  { %88 = shalt.err (!%p85_p2)
}
   0x8   :  { %s89_s18 = scalar_lea.vmem %s16_s10, 128  ;;  %p94_p4 = scmp.lt.s32.totalorder %s16_s10, %s16_s10 }
   0x9   :  { %p90_p3 = scmp.ne.s32.totalorder %s16_s10, %s89_s18  ;;  %p95_p5 = scmp.lt.s32.totalorder %s89_s18, %s89_s18 }
   0xb   :  { %p96_p6 = por %p95_p5, %p94_p4 }
   0xd   :  { %p97_p7 = pnand %p96_p6, %p90_p3 }
   0xf   :  { %100 = shalt.err (!%p97_p7)
}
  0x10   :  { %18 = dma.hbm_to_vmem [thread:$0]  %s160_s0, 128, %s16_s10, [#allocation4]  }
  0x11   :  { %111 = dma.done.wait [#allocation4], 128  }
  0x12   :  { %112 = vsyncadd [#allocation4], 4294967168  ;;  %v116_v0 = vmov 0.0   ;;  %v29_v1 = vld [vmem:[#allocation3] sm:$0xff]  ;;  %v36_v7 = vld [vmem:[%s161_s1] sm:$0x1] }
  0x13   :  { %28 = vst [vmem:[#allocation2] sm:$0x1] %v116_v0  ;;  %v30_v2 = vrot.slane %v29_v1, 4  ;;  %vm46_vm0 = vcmask 1040384   ;;  %s101_s25 = scalar_lea.hbm %s162_s2, 16 }
  0x14   :  { %p102_p8 = scmp.ne.s32.totalorder %s162_s2, %s101_s25  ;;  %p105_p9 = scmp.lt.u32.totalorder %s101_s25, %s162_s2 }
  0x15   :  { %v31_v3 = vadd.f32 %v30_v2, %v29_v1 }
  0x16   :  { %p107_p10 = pnand %p105_p9, %p102_p8 }
  0x17   :  { %v32_v4 = vrot.slane %v31_v3, 2 }
  0x19   :  { %v33_v5 = vadd.f32 %v32_v4, %v31_v3 }
  0x1a   :  { %v38_v10 = vld [vmem:[#allocation2] sm:$0x1] }
  0x1b   :  { %v34_v6 = vrot.slane %v33_v5, 1 }
  0x1d   :  { %v35_v8 = vadd.f32 %v34_v6, %v33_v5 }
  0x1f   :  { %v37_v9 = vsub.f32 %v35_v8, %v36_v7 }
  0x21   :  { %v39_v11 = vmul.f32 %v37_v9, %v37_v9 }
  0x23   :  { %v40_v12 = vadd.f32 %v39_v11, %v38_v10 }
  0x25   :  { %41 = vst [vmem:[#allocation2] sm:$0x1] %v40_v12 }
  0x2c   :  { %v45_v13 = vld [vmem:[#allocation2] sm:$0x1] }
  0x2d   :  { %v47_v14 = vsel %vm46_vm0, %v45_v13, 0.0 }
  0x2e   :  { %48 = vadd.xlane.f32.xlu0 %v47_v14 }
  0xbb   :  { %v49_v15 = vpop.xlane.xlu0 %48 }
  0xbc   :  { %v50_v16 = vrot.slane %v49_v15, 4 }
  0xbe   :  { %v51_v17 = vadd.f32 %v50_v16, %v49_v15 }
  0xc0   :  { %v52_v18 = vrot.slane %v51_v17, 2 }
  0xc2   :  { %v53_v19 = vadd.f32 %v52_v18, %v51_v17 }
  0xc4   :  { %v54_v20 = vrot.slane %v53_v19, 1 }
  0xc6   :  { %v55_v21 = vadd.f32 %v54_v20, %v53_v19 }
  0xc8   :  { %74 = vpush %v55_v21 }
  0xf9   :  { %s75_s0 = spop %74 }
  0xfa   :  { %s57_s1 = smul.f32 0.03125, %s75_s0 }
  0xfc   :  { %59 = sst [smem:[#allocation6]] %s57_s1 }
  0xfd   :  { %110 = shalt.err (!%p107_p10)
}
  0xfe   :  { %s117_s30 = smov [#allocation6]  }
  0xff   :  { %67 = dma.smem_to_hbm %s117_s30, 16, %s162_s2, [#allocation5]  }
 0x100   :  { %113 = dma.done.wait [#allocation5], 16  }
 0x101   :  { %114 = vsyncadd [#allocation5], 4294967280 }
 0x102   :  { %71 = sfence }
 0x103   :  { %72 = vsyncpa [#allocation4], 1 }
 0x104   :  { %73 = vsyncpa [#allocation5], 1 }

</bundles_post_ra>
